<compile_context>
chip_gen: v7x
topology: tpu7x:2x2x1
jax: 0.10.0
libtpu: 0.0.40
codegen_flags: <defaults>
</compile_context>

<pallas_src>
import functools
from enum import Enum

import jax
import jax.numpy as jnp
from jax.experimental import pallas as pl
from jax.experimental.pallas import tpu as pltpu

LANE = 128
SUBLANE = 8


class InputType(Enum):
    A_B = "A_B"
    AxB = "AxB"


def _round_up(x, m):
    return ((x + m - 1) // m) * m


def _fusion_kernel(num_features, num_hidden, axb, compute_dtype, *refs):
    """One batch-tile of the fusion MLP, entirely in VMEM.

    refs = [feat_0..feat_{nf-1},
            w0_piece_0..w0_piece_{k-1}, b0,          # k = 1 (AxB) or nf (A_B split-K)
            (w_j, b_j) for hidden layers 1..nh-1,
            w_cls, b_cls,
            logits_out, last_out]
    """
    cd = compute_dtype
    idx = 0
    feat_refs = refs[idx:idx + num_features]; idx += num_features
    n_w0 = 1 if axb else num_features
    w0_refs = refs[idx:idx + n_w0]; idx += n_w0
    b0_ref = refs[idx]; idx += 1
    hid = []
    for _ in range(num_hidden - 1):
        hid.append((refs[idx], refs[idx + 1])); idx += 2
    wc_ref, bc_ref = refs[idx], refs[idx + 1]; idx += 2
    logits_ref, last_ref = refs[idx], refs[idx + 1]

    # ---- first layer on the fused input (fusion done in-kernel) -----------
    if axb:
        # fused = elementwise product of all feature pieces (VPU, kept f32)
        fused = feat_refs[0][...]
        for fr in feat_refs[1:]:
            fused = fused * fr[...]
        x = jnp.dot(fused.astype(cd), w0_refs[0][...].astype(cd),
                    preferred_element_type=jnp.float32)
    else:
        # concat folded away: split-K accumulation, one matmul per feature piece
        x = jnp.dot(feat_refs[0][...].astype(cd), w0_refs[0][...].astype(cd),
                    preferred_element_type=jnp.float32)
        for fr, wr in zip(feat_refs[1:], w0_refs[1:]):
            x = x + jnp.dot(fr[...].astype(cd), wr[...].astype(cd),
                            preferred_element_type=jnp.float32)
    x = jnp.maximum(x + b0_ref[...], 0.0)          # bias (f32) + ReLU

    # ---- remaining hidden layers: Linear -> ReLU ---------------------------
    for wr, br in hid:
        x = jnp.dot(x.astype(cd), wr[...].astype(cd),
                    preferred_element_type=jnp.float32) + br[...]
        x = jnp.maximum(x, 0.0)

    last_ref[...] = x.astype(last_ref.dtype)

    # ---- classifier head ----------------------------------------------------
    logits = jnp.dot(x.astype(cd), wc_ref[...].astype(cd),
                     preferred_element_type=jnp.float32) + bc_ref[...]
    logits_ref[...] = logits.astype(logits_ref.dtype)


def fusion_forward(features_list, params, *, input_type=InputType.A_B,
                   batch_tile=512, compute_dtype=jnp.float32):
    """JAX wrapper mirroring LinearFusionModelCategorical.forward_fusion.

    features_list : list of [B, F_i] f32 arrays.
    params        : {"hidden": [(W [in,out], b [1,out]), ...],   # pre-transposed
                     "w_cls": [H_last, num_classes], "b_cls": [1, num_classes]}
    Returns (logits [B, num_classes], last_features [B, H_last]).
    """
    input_type = InputType(input_type)
    axb = input_type == InputType.AxB
    feats = [jnp.asarray(f, jnp.float32) for f in features_list]
    B = feats[0].shape[0]
    nf = len(feats)
    hidden = params["hidden"]
    nh = len(hidden)
    assert nh >= 1, "at least one hidden layer required"

    H = [w.shape[1] for (w, _) in hidden]
    Hp = [_round_up(h, LANE) for h in H]          # lane-dense padded widths
    C = params["w_cls"].shape[1]
    Cp = _round_up(C, LANE)
    wd = compute_dtype                            # weight / matmul-input dtype

    # ---- pad batch rows to a multiple of the sublane width (8) -------------
    Bp = _round_up(B, SUBLANE)
    if Bp != B:
        feats = [jnp.pad(f, ((0, Bp - B), (0, 0))) for f in feats]

    # ---- first layer weights: pad output lanes; split rows per feature piece
    w0, b0 = hidden[0]
    w0p = jnp.pad(w0, ((0, 0), (0, Hp[0] - H[0]))).astype(wd)
    b0p = jnp.pad(b0, ((0, 0), (0, Hp[0] - H[0])))            # biases stay f32
    if axb:
        for f in feats:
            assert f.shape == feats[0].shape, "AxB requires equal feature shapes"
        assert feats[0].shape[1] == w0.shape[0]
        w0_pieces = [w0p]
    else:
        widths = [f.shape[1] for f in feats]
        assert sum(widths) == w0.shape[0]
        offs = [0]
        for wdt in widths:
            offs.append(offs[-1] + wdt)
        w0_pieces = [w0p[offs[i]:offs[i + 1], :] for i in range(nf)]

    # ---- remaining hidden layers: pad rows to prev padded width, cols to 128
    hidden_p = []
    for j in range(1, nh):
        w, b = hidden[j]
        wj = jnp.pad(w, ((0, Hp[j - 1] - w.shape[0]), (0, Hp[j] - H[j]))).astype(wd)
        bj = jnp.pad(b, ((0, 0), (0, Hp[j] - H[j])))
        hidden_p.append((wj, bj))

    wc, bc = params["w_cls"], params["b_cls"]
    wcp = jnp.pad(wc, ((0, Hp[-1] - wc.shape[0]), (0, Cp - C))).astype(wd)
    bcp = jnp.pad(bc, ((0, 0), (0, Cp - C)))

    inputs = list(feats) + list(w0_pieces) + [b0p]
    for wj, bj in hidden_p:
        inputs += [wj, bj]
    inputs += [wcp, bcp]

    # ---- batch tiling -------------------------------------------------------
    tb = min(batch_tile, Bp)
    tb = max(SUBLANE, (tb // SUBLANE) * SUBLANE)
    grid = (pl.cdiv(Bp, tb),)

    act_specs = [pl.BlockSpec((tb, f.shape[1]), lambda i: (i, 0)) for f in feats]
    wgt_specs = [pl.BlockSpec(a.shape, lambda i: (0, 0)) for a in inputs[nf:]]
    out_specs = (pl.BlockSpec((tb, Cp), lambda i: (i, 0)),
                 pl.BlockSpec((tb, Hp[-1]), lambda i: (i, 0)))
    out_shape = (jax.ShapeDtypeStruct((Bp, Cp), jnp.float32),
                 jax.ShapeDtypeStruct((Bp, Hp[-1]), jnp.float32))

    # ---- advisory cost estimate + VMEM budget -------------------------------
    k0 = feats[0].shape[1] if axb else sum(f.shape[1] for f in feats)
    flops = 2 * Bp * (k0 * Hp[0]
                      + sum(Hp[j - 1] * Hp[j] for j in range(1, nh))
                      + Hp[-1] * Cp)
    weight_bytes = sum(int(a.size) * a.dtype.itemsize for a in inputs[nf:])
    act_bytes = 4 * Bp * sum(f.shape[1] for f in feats)
    out_bytes = 4 * Bp * (Cp + Hp[-1])
    cost = pl.CostEstimate(flops=int(flops), transcendentals=0,
                           bytes_accessed=int(act_bytes + weight_bytes + out_bytes))

    vmem_est = (sum(2 * tb * f.shape[1] * 4 for f in feats)   # double-buffered act in
                + 2 * tb * (Cp + Hp[-1]) * 4                  # double-buffered act out
                + 2 * weight_bytes                            # resident weights
                + tb * max(Hp) * 4 * 2)                       # live intermediates
    vmem_limit = int(min(max(2 * vmem_est + (4 << 20), 16 << 20), 48 << 20))

    kernel = functools.partial(_fusion_kernel, nf, nh, axb, wd)
    logits_p, last_p = pl.pallas_call(
        kernel,
        out_shape=out_shape,
        grid=grid,
        in_specs=act_specs + wgt_specs,
        out_specs=out_specs,
        compiler_params=pltpu.CompilerParams(
            dimension_semantics=("parallel",),   # shard batch tiles across TCs
            vmem_limit_bytes=vmem_limit),
        cost_estimate=cost,
    )(*inputs)

    # slice zero-padded rows / lanes back to the true module shapes
    return logits_p[:B, :C], last_p[:B, :H[-1]]


# --------------------------- init / reference --------------------------------
def _init_linear(key, in_dim, out_dim):
    # PyTorch nn.Linear default init, weight stored pre-transposed as [in, out].
    kw, kb = jax.random.split(key)
    bound = 1.0 / (in_dim ** 0.5)
    w = jax.random.uniform(kw, (in_dim, out_dim), jnp.float32, -bound, bound)
    b = jax.random.uniform(kb, (1, out_dim), jnp.float32, -bound, bound)
    return w, b


def init_params(key, input_size, hidden_sizes, num_classes):
    keys = jax.random.split(key, len(hidden_sizes) + 1)
    hidden = []
    cur = input_size
    for i, h in enumerate(hidden_sizes):
        hidden.append(_init_linear(keys[i], cur, h))
        cur = h
    w_cls, b_cls = _init_linear(keys[-1], cur, num_classes)
    return {"hidden": hidden, "w_cls": w_cls, "b_cls": b_cls}


def _reference_forward(features_list, params, input_type, compute_dtype=jnp.float32):
    input_type = InputType(input_type)
    cd = compute_dtype
    if input_type == InputType.AxB:
        x = features_list[0]
        for f in features_list[1:]:
            x = x * f
    else:
        x = jnp.concatenate(features_list, axis=1)
    for w, b in params["hidden"]:
        x = jnp.dot(x.astype(cd), w.astype(cd), preferred_element_type=jnp.float32) + b
        x = jnp.maximum(x, 0.0)
    logits = jnp.dot(x.astype(cd), params["w_cls"].astype(cd),
                     preferred_element_type=jnp.float32) + params["b_cls"]
    return logits, x


# --------------------------------- self-test ---------------------------------
if __name__ == "__main__":
    key = jax.random.PRNGKey(0)
    batch = 8
    embed_dim = 32
    num_features = 4            # image, caption, question_type, question_rest
    hidden_sizes = [128, 64]
    num_classes = 16

    k_feat, k_ab, k_axb = jax.random.split(key, 3)
    feat_keys = jax.random.split(k_feat, num_features)
    feats = [jax.random.normal(k, (batch, embed_dim), jnp.float32) for k in feat_keys]

    # ---- InputType.A_B (concatenation), f32 path ---------------------------
    params_ab = init_params(k_ab, embed_dim * num_features, hidden_sizes, num_classes)
    logits, last = fusion_forward(feats, params_ab, input_type=InputType.A_B)
    jax.block_until_ready((logits, last))
    ref_logits, ref_last = _reference_forward(feats, params_ab, InputType.A_B)
    assert logits.shape == (batch, num_classes)
    assert last.shape == (batch, hidden_sizes[-1])
    assert jnp.allclose(logits, ref_logits, atol=1e-4, rtol=1e-4)
    assert jnp.allclose(last, ref_last, atol=1e-4, rtol=1e-4)

    # ---- same model, bf16 weights / matmul inputs (f32 accumulation) -------
    logits_bf, last_bf = fusion_forward(feats, params_ab, input_type=InputType.A_B,
                                        compute_dtype=jnp.bfloat16)
    jax.block_until_ready((logits_bf, last_bf))
    ref_logits_bf, ref_last_bf = _reference_forward(feats, params_ab, InputType.A_B,
                                                    compute_dtype=jnp.bfloat16)
    assert jnp.allclose(logits_bf, ref_logits_bf, atol=1e-2, rtol=1e-2)
    assert jnp.allclose(last_bf, ref_last_bf, atol=1e-2, rtol=1e-2)

    # ---- InputType.AxB (elementwise product), f32 path ---------------------
    params_axb = init_params(k_axb, embed_dim, hidden_sizes, num_classes)
    logits_x, last_x = fusion_forward(feats, params_axb, input_type=InputType.AxB)
    jax.block_until_ready((logits_x, last_x))
    ref_logits_x, ref_last_x = _reference_forward(feats, params_axb, InputType.AxB)
    assert jnp.allclose(logits_x, ref_logits_x, atol=1e-4, rtol=1e-4)
    assert jnp.allclose(last_x, ref_last_x, atol=1e-4, rtol=1e-4)

    # ---- non-multiple-of-8 batch (exercises the batch-padding path) --------
    feats_odd = [f[:5] for f in feats]
    logits_o, last_o = fusion_forward(feats_odd, params_ab, input_type=InputType.A_B)
    jax.block_until_ready((logits_o, last_o))
    ref_logits_o, ref_last_o = _reference_forward(feats_odd, params_ab, InputType.A_B)
    assert logits_o.shape == (5, num_classes) and last_o.shape == (5, hidden_sizes[-1])
    assert jnp.allclose(logits_o, ref_logits_o, atol=1e-4, rtol=1e-4)
    assert jnp.allclose(last_o, ref_last_o, atol=1e-4, rtol=1e-4)

    print("KERNEL_OK")
</pallas_src>

<mosaic_0001>
module attributes {stable_mosaic.version = 11 : i64} {
  func.func @_fusion_kernel(%arg0: i32, %arg1: memref<8x32xf32, #tpu.memory_space<vmem>>, %arg2: memref<8x32xf32, #tpu.memory_space<vmem>>, %arg3: memref<8x32xf32, #tpu.memory_space<vmem>>, %arg4: memref<8x32xf32, #tpu.memory_space<vmem>>, %arg5: memref<32x128xf32, #tpu.memory_space<vmem>>, %arg6: memref<32x128xf32, #tpu.memory_space<vmem>>, %arg7: memref<32x128xf32, #tpu.memory_space<vmem>>, %arg8: memref<32x128xf32, #tpu.memory_space<vmem>>, %arg9: memref<1x128xf32, #tpu.memory_space<vmem>>, %arg10: memref<128x128xf32, #tpu.memory_space<vmem>>, %arg11: memref<1x128xf32, #tpu.memory_space<vmem>>, %arg12: memref<128x128xf32, #tpu.memory_space<vmem>>, %arg13: memref<1x128xf32, #tpu.memory_space<vmem>>, %arg14: memref<8x128xf32, #tpu.memory_space<vmem>>, %arg15: memref<8x128xf32, #tpu.memory_space<vmem>>) attributes {dimension_semantics = [#tpu.dimension_semantics<parallel>], iteration_bounds = array<i64: 1>, scalar_prefetch = 0 : i64, scratch_operands = 0 : i64, tpu.core_type = #tpu.core_type<tc>, window_params = [{transform_indices = @transform_0, window_bounds = array<i64: 8, 32>}, {transform_indices = @transform_1, window_bounds = array<i64: 8, 32>}, {transform_indices = @transform_2, window_bounds = array<i64: 8, 32>}, {transform_indices = @transform_3, window_bounds = array<i64: 8, 32>}, {pipeline_mode = #tpu.pipeline_mode<synchronous>, transform_indices = @transform_4, window_bounds = array<i64: 32, 128>}, {pipeline_mode = #tpu.pipeline_mode<synchronous>, transform_indices = @transform_5, window_bounds = array<i64: 32, 128>}, {pipeline_mode = #tpu.pipeline_mode<synchronous>, transform_indices = @transform_6, window_bounds = array<i64: 32, 128>}, {pipeline_mode = #tpu.pipeline_mode<synchronous>, transform_indices = @transform_7, window_bounds = array<i64: 32, 128>}, {pipeline_mode = #tpu.pipeline_mode<synchronous>, transform_indices = @transform_8, window_bounds = array<i64: 1, 128>}, {pipeline_mode = #tpu.pipeline_mode<synchronous>, transform_indices = @transform_9, window_bounds = array<i64: 128, 128>}, {pipeline_mode = #tpu.pipeline_mode<synchronous>, transform_indices = @transform_10, window_bounds = array<i64: 1, 128>}, {pipeline_mode = #tpu.pipeline_mode<synchronous>, transform_indices = @transform_11, window_bounds = array<i64: 128, 128>}, {pipeline_mode = #tpu.pipeline_mode<synchronous>, transform_indices = @transform_12, window_bounds = array<i64: 1, 128>}, {transform_indices = @transform_13, window_bounds = array<i64: 8, 128>}, {transform_indices = @transform_14, window_bounds = array<i64: 8, 128>}]} {
    %c0 = arith.constant 0 : index
    %c0_0 = arith.constant 0 : index
    %0 = vector.load %arg1[%c0, %c0_0] : memref<8x32xf32, #tpu.memory_space<vmem>>, vector<8x32xf32>
    %c0_1 = arith.constant 0 : index
    %c0_2 = arith.constant 0 : index
    %1 = vector.load %arg5[%c0_1, %c0_2] : memref<32x128xf32, #tpu.memory_space<vmem>>, vector<32x128xf32>
    %cst = arith.constant dense<0.000000e+00> : vector<8x128xf32>
    %2 = tpu.matmul %0, %1, %cst {dimension_numbers = #tpu.dot_dimension_numbers<[1], [0], [0], [1], [0, 0, 1, 1], [], []>} : vector<8x32xf32>, vector<32x128xf32>, vector<8x128xf32> -> vector<8x128xf32>
    %c0_3 = arith.constant 0 : index
    %c0_4 = arith.constant 0 : index
    %3 = vector.load %arg2[%c0_3, %c0_4] : memref<8x32xf32, #tpu.memory_space<vmem>>, vector<8x32xf32>
    %c0_5 = arith.constant 0 : index
    %c0_6 = arith.constant 0 : index
    %4 = vector.load %arg6[%c0_5, %c0_6] : memref<32x128xf32, #tpu.memory_space<vmem>>, vector<32x128xf32>
    %cst_7 = arith.constant dense<0.000000e+00> : vector<8x128xf32>
    %5 = tpu.matmul %3, %4, %cst_7 {dimension_numbers = #tpu.dot_dimension_numbers<[1], [0], [0], [1], [0, 0, 1, 1], [], []>} : vector<8x32xf32>, vector<32x128xf32>, vector<8x128xf32> -> vector<8x128xf32>
    %6 = arith.addf %2, %5 : vector<8x128xf32>
    %c0_8 = arith.constant 0 : index
    %c0_9 = arith.constant 0 : index
    %7 = vector.load %arg3[%c0_8, %c0_9] : memref<8x32xf32, #tpu.memory_space<vmem>>, vector<8x32xf32>
    %c0_10 = arith.constant 0 : index
    %c0_11 = arith.constant 0 : index
    %8 = vector.load %arg7[%c0_10, %c0_11] : memref<32x128xf32, #tpu.memory_space<vmem>>, vector<32x128xf32>
    %cst_12 = arith.constant dense<0.000000e+00> : vector<8x128xf32>
    %9 = tpu.matmul %7, %8, %cst_12 {dimension_numbers = #tpu.dot_dimension_numbers<[1], [0], [0], [1], [0, 0, 1, 1], [], []>} : vector<8x32xf32>, vector<32x128xf32>, vector<8x128xf32> -> vector<8x128xf32>
    %10 = arith.addf %6, %9 : vector<8x128xf32>
    %c0_13 = arith.constant 0 : index
    %c0_14 = arith.constant 0 : index
    %11 = vector.load %arg4[%c0_13, %c0_14] : memref<8x32xf32, #tpu.memory_space<vmem>>, vector<8x32xf32>
    %c0_15 = arith.constant 0 : index
    %c0_16 = arith.constant 0 : index
    %12 = vector.load %arg8[%c0_15, %c0_16] : memref<32x128xf32, #tpu.memory_space<vmem>>, vector<32x128xf32>
    %cst_17 = arith.constant dense<0.000000e+00> : vector<8x128xf32>
    %13 = tpu.matmul %11, %12, %cst_17 {dimension_numbers = #tpu.dot_dimension_numbers<[1], [0], [0], [1], [0, 0, 1, 1], [], []>} : vector<8x32xf32>, vector<32x128xf32>, vector<8x128xf32> -> vector<8x128xf32>
    %14 = arith.addf %10, %13 : vector<8x128xf32>
    %c0_18 = arith.constant 0 : index
    %c0_19 = arith.constant 0 : index
    %15 = vector.load %arg9[%c0_18, %c0_19] : memref<1x128xf32, #tpu.memory_space<vmem>>, vector<1x128xf32>
    %16 = vector.broadcast %15 : vector<1x128xf32> to vector<8x128xf32>
    %17 = arith.addf %14, %16 : vector<8x128xf32>
    %cst_20 = arith.constant 0.000000e+00 : f32
    %18 = vector.broadcast %cst_20 : f32 to vector<8x128xf32>
    %19 = arith.maximumf %17, %18 : vector<8x128xf32>
    %c0_21 = arith.constant 0 : index
    %c0_22 = arith.constant 0 : index
    %20 = vector.load %arg10[%c0_21, %c0_22] : memref<128x128xf32, #tpu.memory_space<vmem>>, vector<128x128xf32>
    %cst_23 = arith.constant dense<0.000000e+00> : vector<8x128xf32>
    %21 = tpu.matmul %19, %20, %cst_23 {dimension_numbers = #tpu.dot_dimension_numbers<[1], [0], [0], [1], [0, 0, 1, 1], [], []>} : vector<8x128xf32>, vector<128x128xf32>, vector<8x128xf32> -> vector<8x128xf32>
    %c0_24 = arith.constant 0 : index
    %c0_25 = arith.constant 0 : index
    %22 = vector.load %arg11[%c0_24, %c0_25] : memref<1x128xf32, #tpu.memory_space<vmem>>, vector<1x128xf32>
    %23 = vector.broadcast %22 : vector<1x128xf32> to vector<8x128xf32>
    %24 = arith.addf %21, %23 : vector<8x128xf32>
    %cst_26 = arith.constant 0.000000e+00 : f32
    %25 = vector.broadcast %cst_26 : f32 to vector<8x128xf32>
    %26 = arith.maximumf %24, %25 : vector<8x128xf32>
    %c0_27 = arith.constant 0 : index
    %c0_28 = arith.constant 0 : index
    %27 = vector.load %arg15[%c0_27, %c0_28] : memref<8x128xf32, #tpu.memory_space<vmem>>, vector<8x128xf32>
    tpu.vector_store %arg15[%c0_27, %c0_28], %26 {strides = array<i32>} : memref<8x128xf32, #tpu.memory_space<vmem>>, vector<8x128xf32>,
    %c0_29 = arith.constant 0 : index
    %c0_30 = arith.constant 0 : index
    %28 = vector.load %arg12[%c0_29, %c0_30] : memref<128x128xf32, #tpu.memory_space<vmem>>, vector<128x128xf32>
    %cst_31 = arith.constant dense<0.000000e+00> : vector<8x128xf32>
    %29 = tpu.matmul %26, %28, %cst_31 {dimension_numbers = #tpu.dot_dimension_numbers<[1], [0], [0], [1], [0, 0, 1, 1], [], []>} : vector<8x128xf32>, vector<128x128xf32>, vector<8x128xf32> -> vector<8x128xf32>
    %c0_32 = arith.constant 0 : index
    %c0_33 = arith.constant 0 : index
    %30 = vector.load %arg13[%c0_32, %c0_33] : memref<1x128xf32, #tpu.memory_space<vmem>>, vector<1x128xf32>
    %31 = vector.broadcast %30 : vector<1x128xf32> to vector<8x128xf32>
    %32 = arith.addf %29, %31 : vector<8x128xf32>
    %c0_34 = arith.constant 0 : index
    %c0_35 = arith.constant 0 : index
    %33 = vector.load %arg14[%c0_34, %c0_35] : memref<8x128xf32, #tpu.memory_space<vmem>>, vector<8x128xf32>
    tpu.vector_store %arg14[%c0_34, %c0_35], %32 {strides = array<i32>} : memref<8x128xf32, #tpu.memory_space<vmem>>, vector<8x128xf32>,
    return
  }
  func.func @transform_0(%arg0: i32) -> (i32, i32) {
    %c0_i32 = arith.constant 0 : i32
    %c0_i32_0 = arith.constant 0 : i32
    return %arg0, %c0_i32 : i32, i32
  }
  func.func @transform_1(%arg0: i32) -> (i32, i32) {
    %c0_i32 = arith.constant 0 : i32
    %c0_i32_0 = arith.constant 0 : i32
    return %arg0, %c0_i32 : i32, i32
  }
  func.func @transform_2(%arg0: i32) -> (i32, i32) {
    %c0_i32 = arith.constant 0 : i32
    %c0_i32_0 = arith.constant 0 : i32
    return %arg0, %c0_i32 : i32, i32
  }
  func.func @transform_3(%arg0: i32) -> (i32, i32) {
    %c0_i32 = arith.constant 0 : i32
    %c0_i32_0 = arith.constant 0 : i32
    return %arg0, %c0_i32 : i32, i32
  }
  func.func @transform_4(%arg0: i32) -> (i32, i32) {
    %c0_i32 = arith.constant 0 : i32
    %c0_i32_0 = arith.constant 0 : i32
    %c0_i32_1 = arith.constant 0 : i32
    return %c0_i32, %c0_i32_0 : i32, i32
  }
  func.func @transform_5(%arg0: i32) -> (i32, i32) {
    %c0_i32 = arith.constant 0 : i32
    %c0_i32_0 = arith.constant 0 : i32
    %c0_i32_1 = arith.constant 0 : i32
    return %c0_i32, %c0_i32_0 : i32, i32
  }
  func.func @transform_6(%arg0: i32) -> (i32, i32) {
    %c0_i32 = arith.constant 0 : i32
    %c0_i32_0 = arith.constant 0 : i32
    %c0_i32_1 = arith.constant 0 : i32
    return %c0_i32, %c0_i32_0 : i32, i32
  }
  func.func @transform_7(%arg0: i32) -> (i32, i32) {
    %c0_i32 = arith.constant 0 : i32
    %c0_i32_0 = arith.constant 0 : i32
    %c0_i32_1 = arith.constant 0 : i32
    return %c0_i32, %c0_i32_0 : i32, i32
  }
  func.func @transform_8(%arg0: i32) -> (i32, i32) {
    %c0_i32 = arith.constant 0 : i32
    %c0_i32_0 = arith.constant 0 : i32
    %c0_i32_1 = arith.constant 0 : i32
    return %c0_i32, %c0_i32_0 : i32, i32
  }
  func.func @transform_9(%arg0: i32) -> (i32, i32) {
    %c0_i32 = arith.constant 0 : i32
    %c0_i32_0 = arith.constant 0 : i32
    %c0_i32_1 = arith.constant 0 : i32
    return %c0_i32, %c0_i32_0 : i32, i32
  }
  func.func @transform_10(%arg0: i32) -> (i32, i32) {
    %c0_i32 = arith.constant 0 : i32
    %c0_i32_0 = arith.constant 0 : i32
    %c0_i32_1 = arith.constant 0 : i32
    return %c0_i32, %c0_i32_0 : i32, i32
  }
  func.func @transform_11(%arg0: i32) -> (i32, i32) {
    %c0_i32 = arith.constant 0 : i32
    %c0_i32_0 = arith.constant 0 : i32
    %c0_i32_1 = arith.constant 0 : i32
    return %c0_i32, %c0_i32_0 : i32, i32
  }
  func.func @transform_12(%arg0: i32) -> (i32, i32) {
    %c0_i32 = arith.constant 0 : i32
    %c0_i32_0 = arith.constant 0 : i32
    %c0_i32_1 = arith.constant 0 : i32
    return %c0_i32, %c0_i32_0 : i32, i32
  }
  func.func @transform_13(%arg0: i32) -> (i32, i32) {
    %c0_i32 = arith.constant 0 : i32
    %c0_i32_0 = arith.constant 0 : i32
    return %arg0, %c0_i32 : i32, i32
  }
  func.func @transform_14(%arg0: i32) -> (i32, i32) {
    %c0_i32 = arith.constant 0 : i32
    %c0_i32_0 = arith.constant 0 : i32
    return %arg0, %c0_i32 : i32, i32
  }
}

</mosaic_0001>

<bundles_post_ra>
// kernel: tpu_custom_call.1
= control target key start
LH: loop header
LB: loop body
LE: loop exit
PB: predicated region body
PF: predicated region fallthrough
CT: control target
= control target key end

     0   :  { %20 = vsyncpa [#allocation3], 0  ;;  %s1543_s0 = inlined_call_operand.hbm [shape: f32[8,32], index: 0, kind: input, shape index: {}]   ;;  %s1544_s1 = inlined_call_operand.hbm [shape: f32[8,32], index: 1, kind: input, shape index: {}]   ;;  %s1545_s2 = inlined_call_operand.hbm [shape: f32[8,32], index: 2, kind: input, shape index: {}]   ;;  %s1546_s3 = inlined_call_operand.vmem [shape: f32[8,32], index: 3, kind: input, shape index: {}]   ;;  %s1547_s4 = inlined_call_operand.hbm [shape: f32[32,128], index: 4, kind: input, shape index: {}]   ;;  %s1548_s5 = inlined_call_operand.hbm [shape: f32[32,128], index: 5, kind: input, shape index: {}]   ;;  %s1549_s6 = inlined_call_operand.hbm [shape: f32[32,128], index: 6, kind: input, shape index: {}]   ;;  %s1550_s7 = inlined_call_operand.hbm [shape: f32[32,128], index: 7, kind: input, shape index: {}]   ;;  %s1551_s8 = inlined_call_operand.vmem [shape: f32[1,128], index: 8, kind: input, shape index: {}]   ;;  %s1552_s9 = inlined_call_operand.hbm [shape: f32[128,128], index: 9, kind: input, shape index: {}]   ;;  %s1553_s10 = inlined_call_operand.vmem [shape: f32[1,128], index: 10, kind: input, shape index: {}]   ;;  %s1554_s11 = inlined_call_operand.hbm [shape: f32[128,128], index: 11, kind: input, shape index: {}]   ;;  %s1555_s12 = inlined_call_operand.vmem [shape: f32[1,128], index: 12, kind: input, shape index: {}]   ;;  %s1556_s13 = inlined_call_operand.hbm [shape: f32[8,128], index: 13, kind: output, shape index: {0}]   ;;  %s1557_s14 = inlined_call_operand.hbm [shape: f32[8,128], index: 14, kind: output, shape index: {1}]  }
   0x1   :  { %21 = vsyncpa [#allocation6], 0 }
   0x2   :  { %22 = vsyncpa [#allocation9], 0 }
   0x3   :  { %23 = vsyncpa [#allocation12], 0 }
   0x4   :  { %24 = vsyncpa [#allocation15], 0 }
   0x5   :  { %25 = vsyncpa [#allocation4], 0 }
   0x6   :  { %26 = vsyncpa [#allocation19], 0  ;;  %s1229_s29 = smov [#allocation5]   ;;  %s1230_s15 = smov [#allocation8]  }
   0x7   :  { %s43_s30 = sshll.u32 %s1229_s29, 4  ;;  %s64_s16 = sshll.u32 %s1230_s15, 4  ;;  %s44_s30 = int_to_ptr.vmem [resolvable:$true] %s43_s30  ;;  %s1320_s16 = int_to_ptr.vmem [resolvable:$true] %s64_s16 }
   0x8   :  { %s973_s19 = scalar_lea.hbm %s1544_s1, 128 }
   0x9   :  { %p974_p0 = scmp.ne.s32.totalorder %s1544_s1, %s973_s19  ;;  %p977_p1 = scmp.lt.u32.totalorder %s973_s19, %s1544_s1 }
   0xb   :  { %p979_p2 = pnand %p977_p1, %p974_p0 }
   0xd   :  { %982 = shalt.err (!%p979_p2)
}
   0xe   :  { %s983_s24 = scalar_lea.vmem %s44_s30, 128  ;;  %p988_p4 = scmp.lt.s32.totalorder %s44_s30, %s44_s30 }
   0xf   :  { %p984_p3 = scmp.ne.s32.totalorder %s44_s30, %s983_s24  ;;  %p989_p5 = scmp.lt.s32.totalorder %s983_s24, %s983_s24 }
  0x11   :  { %p990_p6 = por %p989_p5, %p988_p4 }
  0x13   :  { %p991_p7 = pnand %p990_p6, %p984_p3 }
  0x15   :  { %994 = shalt.err (!%p991_p7)
}
  0x16   :  { %46 = dma.hbm_to_vmem [thread:$0]  %s1544_s1, 128, %s44_s30, [#allocation6]  }
  0x17   :  { %s995_s29 = scalar_lea.hbm %s1547_s4, 512 }
  0x18   :  { %p996_p8 = scmp.ne.s32.totalorder %s1547_s4, %s995_s29  ;;  %p999_p9 = scmp.lt.u32.totalorder %s995_s29, %s1547_s4 }
  0x1a   :  { %p1001_p10 = pnand %p999_p9, %p996_p8 }
  0x1c   :  { %1004 = shalt.err (!%p1001_p10)
}
  0x1d   :  { %s1005_s20 = scalar_lea.vmem %s1320_s16, 512  ;;  %p1010_p12 = scmp.lt.s32.totalorder %s1320_s16, %s1320_s16 }
  0x1e   :  { %p1006_p11 = scmp.ne.s32.totalorder %s1320_s16, %s1005_s20  ;;  %p1011_p13 = scmp.lt.s32.totalorder %s1005_s20, %s1005_s20 }
  0x20   :  { %p1012_p0 = por %p1011_p13, %p1010_p12 }
  0x22   :  { %p1013_p1 = pnand %p1012_p0, %p1006_p11 }
  0x24   :  { %1016 = shalt.err (!%p1013_p1)
}
  0x25   :  { %s1231_s1 = smov 128   ;;  %s1232_s30 = smov 8  }
  0x26   :  { %70 = dma.hbm_to_vmem [thread:$0]  %s1547_s4, 512, %s1320_s16, [#allocation9], %s1231_s1, %s1231_s1, %s1232_s30  }
  0x27   :  { %s1233_s23 = smov [#allocation11]   ;;  %s1234_s25 = smov [#allocation14]  }
  0x28   :  { %s88_s24 = sshll.u32 %s1233_s23, 4  ;;  %s114_s26 = sshll.u32 %s1234_s25, 4  ;;  %s89_s24 = int_to_ptr.vmem [resolvable:$true] %s88_s24  ;;  %s1354_s26 = int_to_ptr.vmem [resolvable:$true] %s114_s26 }
  0x29   :  { %s1017_s29 = scalar_lea.hbm %s1549_s6, 512 }
  0x2a   :  { %p1018_p2 = scmp.ne.s32.totalorder %s1549_s6, %s1017_s29  ;;  %p1021_p3 = scmp.lt.u32.totalorder %s1017_s29, %s1549_s6 }
  0x2c   :  { %p1023_p4 = pnand %p1021_p3, %p1018_p2 }
  0x2e   :  { %1026 = shalt.err (!%p1023_p4)
}
  0x2f   :  { %s1027_s4 = scalar_lea.vmem %s89_s24, 512  ;;  %p1032_p6 = scmp.lt.s32.totalorder %s89_s24, %s89_s24 }
  0x30   :  { %p1028_p5 = scmp.ne.s32.totalorder %s89_s24, %s1027_s4  ;;  %p1033_p7 = scmp.lt.s32.totalorder %s1027_s4, %s1027_s4 }
  0x32   :  { %p1034_p8 = por %p1033_p7, %p1032_p6 }
  0x34   :  { %p1035_p9 = pnand %p1034_p8, %p1028_p5 }
  0x36   :  { %1038 = shalt.err (!%p1035_p9)
}
  0x37   :  { %94 = dma.hbm_to_vmem [thread:$0]  %s1549_s6, 512, %s89_s24, [#allocation12], %s1231_s1, %s1231_s1, %s1232_s30  }
  0x38   :  { %s1039_s23 = scalar_lea.hbm %s1552_s9, 2048 }
  0x39   :  { %p1040_p10 = scmp.ne.s32.totalorder %s1552_s9, %s1039_s23  ;;  %p1043_p11 = scmp.lt.u32.totalorder %s1039_s23, %s1552_s9 }
  0x3b   :  { %p1045_p12 = pnand %p1043_p11, %p1040_p10 }
  0x3d   :  { %1048 = shalt.err (!%p1045_p12)
}
  0x3e   :  { %s1049_s15 = scalar_lea.vmem %s1354_s26, 2048  ;;  %p1054_p0 = scmp.lt.s32.totalorder %s1354_s26, %s1354_s26 }
  0x3f   :  { %p1050_p13 = scmp.ne.s32.totalorder %s1354_s26, %s1049_s15  ;;  %p1055_p1 = scmp.lt.s32.totalorder %s1049_s15, %s1049_s15 }
  0x41   :  { %p1056_p2 = por %p1055_p1, %p1054_p0 }
  0x43   :  { %p1057_p3 = pnand %p1056_p2, %p1050_p13 }
  0x45   :  { %1060 = shalt.err (!%p1057_p3)
}
  0x46   :  { %120 = dma.hbm_to_vmem [thread:$0]  %s1552_s9, 2048, %s1354_s26, [#allocation15], %s1231_s1, %s1231_s1, %s1232_s30  }
  0x47   :  { %s1235_s17 = smov [#allocation2]   ;;  %s1236_s19 = smov [#allocation7]  }
  0x48   :  { %s33_s18 = sshll.u32 %s1235_s17, 4  ;;  %s53_s4 = sshll.u32 %s1236_s19, 4  ;;  %s34_s18 = int_to_ptr.vmem [resolvable:$true] %s33_s18  ;;  %s54_s4 = int_to_ptr.vmem [resolvable:$true] %s53_s4 }
  0x49   :  { %s1061_s21 = scalar_lea.hbm %s1543_s0, 128 }
  0x4a   :  { %p1062_p4 = scmp.ne.s32.totalorder %s1543_s0, %s1061_s21  ;;  %p1065_p5 = scmp.lt.u32.totalorder %s1061_s21, %s1543_s0 }
  0x4c   :  { %p1067_p6 = pnand %p1065_p5, %p1062_p4 }
  0x4e   :  { %1070 = shalt.err (!%p1067_p6)
}
  0x4f   :  { %s1071_s9 = scalar_lea.vmem %s34_s18, 128  ;;  %p1076_p8 = scmp.lt.s32.totalorder %s34_s18, %s34_s18 }
  0x50   :  { %p1072_p7 = scmp.ne.s32.totalorder %s34_s18, %s1071_s9  ;;  %p1077_p9 = scmp.lt.s32.totalorder %s1071_s9, %s1071_s9 }
  0x52   :  { %p1078_p10 = por %p1077_p9, %p1076_p8 }
  0x54   :  { %p1079_p11 = pnand %p1078_p10, %p1072_p7 }
  0x56   :  { %1082 = shalt.err (!%p1079_p11)
}
  0x57   :  { %36 = dma.hbm_to_vmem [thread:$0]  %s1543_s0, 128, %s34_s18, [#allocation3]  }
  0x58   :  { %s1083_s6 = scalar_lea.hbm %s1545_s2, 128 }
  0x59   :  { %p1084_p12 = scmp.ne.s32.totalorder %s1545_s2, %s1083_s6  ;;  %p1087_p13 = scmp.lt.u32.totalorder %s1083_s6, %s1545_s2 }
  0x5b   :  { %p1089_p0 = pnand %p1087_p13, %p1084_p12 }
  0x5d   :  { %1092 = shalt.err (!%p1089_p0)
}
  0x5e   :  { %s1093_s20 = scalar_lea.vmem %s54_s4, 128  ;;  %p1098_p2 = scmp.lt.s32.totalorder %s54_s4, %s54_s4 }
  0x5f   :  { %p1094_p1 = scmp.ne.s32.totalorder %s54_s4, %s1093_s20  ;;  %p1099_p3 = scmp.lt.s32.totalorder %s1093_s20, %s1093_s20 }
  0x61   :  { %p1100_p4 = por %p1099_p3, %p1098_p2 }
  0x63   :  { %p1101_p5 = pnand %p1100_p4, %p1094_p1 }
  0x65   :  { %1104 = shalt.err (!%p1101_p5)
}
  0x66   :  { %56 = dma.hbm_to_vmem [thread:$0]  %s1545_s2, 128, %s54_s4, [#allocation6]  }
  0x67   :  { %s1237_s21 = smov [#allocation10]   ;;  %s1238_s23 = smov [#allocation13]  }
  0x68   :  { %s76_s22 = sshll.u32 %s1237_s21, 4  ;;  %s100_s25 = sshll.u32 %s1238_s23, 4  ;;  %s77_s22 = int_to_ptr.vmem [resolvable:$true] %s76_s22  ;;  %s1415_s25 = int_to_ptr.vmem [resolvable:$true] %s100_s25 }
  0x69   :  { %s1105_s26 = scalar_lea.hbm %s1548_s5, 512 }
  0x6a   :  { %p1106_p6 = scmp.ne.s32.totalorder %s1548_s5, %s1105_s26  ;;  %p1109_p7 = scmp.lt.u32.totalorder %s1105_s26, %s1548_s5 }
  0x6c   :  { %p1111_p8 = pnand %p1109_p7, %p1106_p6 }
  0x6e   :  { %1114 = shalt.err (!%p1111_p8)
}
  0x6f   :  { %s1115_s2 = scalar_lea.vmem %s77_s22, 512  ;;  %p1120_p10 = scmp.lt.s32.totalorder %s77_s22, %s77_s22 }
  0x70   :  { %p1116_p9 = scmp.ne.s32.totalorder %s77_s22, %s1115_s2  ;;  %p1121_p11 = scmp.lt.s32.totalorder %s1115_s2, %s1115_s2 }
  0x72   :  { %p1122_p12 = por %p1121_p11, %p1120_p10 }
  0x74   :  { %p1123_p13 = pnand %p1122_p12, %p1116_p9 }
  0x76   :  { %1126 = shalt.err (!%p1123_p13)
}
  0x77   :  { %82 = dma.hbm_to_vmem [thread:$0]  %s1548_s5, 512, %s77_s22, [#allocation9], %s1231_s1, %s1231_s1, %s1232_s30  }
  0x78   :  { %s1127_s16 = scalar_lea.hbm %s1550_s7, 512 }
  0x79   :  { %p1128_p0 = scmp.ne.s32.totalorder %s1550_s7, %s1127_s16  ;;  %p1131_p1 = scmp.lt.u32.totalorder %s1127_s16, %s1550_s7 }
  0x7b   :  { %p1133_p2 = pnand %p1131_p1, %p1128_p0 }
  0x7d   :  { %1136 = shalt.err (!%p1133_p2)
}
  0x7e   :  { %s1137_s23 = scalar_lea.vmem %s1415_s25, 512  ;;  %p1142_p4 = scmp.lt.s32.totalorder %s1415_s25, %s1415_s25 }
  0x7f   :  { %p1138_p3 = scmp.ne.s32.totalorder %s1415_s25, %s1137_s23  ;;  %p1143_p5 = scmp.lt.s32.totalorder %s1137_s23, %s1137_s23 }
  0x81   :  { %p1144_p6 = por %p1143_p5, %p1142_p4 }
  0x83   :  { %p1145_p7 = pnand %p1144_p6, %p1138_p3 }
  0x85   :  { %1148 = shalt.err (!%p1145_p7)
}
  0x86   :  { %106 = dma.hbm_to_vmem [thread:$0]  %s1550_s7, 512, %s1415_s25, [#allocation12], %s1231_s1, %s1231_s1, %s1232_s30  }
  0x87   :  { %s1239_s27 = smov [#allocation16]   ;;  %s1149_s29 = scalar_lea.hbm %s1554_s11, 2048 }
  0x88   :  { %s128_s9 = sshll.u32 %s1239_s27, 4  ;;  %p1150_p8 = scmp.ne.s32.totalorder %s1554_s11, %s1149_s29  ;;  %s129_s9 = int_to_ptr.vmem [resolvable:$true] %s128_s9 }
  0x89   :  { %p1153_p9 = scmp.lt.u32.totalorder %s1149_s29, %s1554_s11 }
  0x8b   :  { %p1155_p10 = pnand %p1153_p9, %p1150_p8 }
  0x8d   :  { %1158 = shalt.err (!%p1155_p10)
}
  0x8e   :  { %s1159_s24 = scalar_lea.vmem %s129_s9, 2048  ;;  %p1164_p12 = scmp.lt.s32.totalorder %s129_s9, %s129_s9 }
  0x8f   :  { %p1160_p11 = scmp.ne.s32.totalorder %s129_s9, %s1159_s24  ;;  %p1165_p13 = scmp.lt.s32.totalorder %s1159_s24, %s1159_s24 }
  0x91   :  { %p1166_p0 = por %p1165_p13, %p1164_p12 }
  0x93   :  { %p1167_p1 = pnand %p1166_p0, %p1160_p11 }
  0x95   :  { %1170 = shalt.err (!%p1167_p1)
}
  0x96   :  { %134 = dma.hbm_to_vmem [thread:$0]  %s1554_s11, 2048, %s129_s9, [#allocation15], %s1231_s1, %s1231_s1, %s1232_s30  }
  0x97   :  { %1215 = dma.done.wait [#allocation3], 128  }
  0x98   :  { %1216 = vsyncadd [#allocation3], 4294967168 }
  0x99   :  { %1217 = dma.done.wait [#allocation6], 256  }
  0x9a   :  { %1218 = vsyncadd [#allocation6], 4294967040 }
  0x9b   :  { %1219 = dma.done.wait [#allocation9], 1024  }
  0x9c   :  { %1220 = vsyncadd [#allocation9], 4294966272 }
  0x9d   :  { %1221 = dma.done.wait [#allocation12], 1024  }
  0x9e   :  { %1222 = vsyncadd [#allocation12], 4294966272 }
  0x9f   :  { %1223 = dma.done.wait [#allocation15], 4096  }
  0xa0   :  { %1224 = vsyncadd [#allocation15], 4294963200  ;;  %v1240_v0 = vmov 0.0|0.0   ;;  %vm1241_vm0 = vmmov 0   ;;  %v1242_v1 = vmov 0.0   ;;  %v170_v2 = vld [vmem:[#allocation10] sm:$0xff] }
  0xa1   :  { %885 = vmatprep.subr.bf16.mxu0 %v1240_v0  ;;  %891 = vmatprep.subr.bf16.mxu1 %v1240_v0  ;;  %v171_v3 = vld [vmem:[#allocation10 + $0x8] sm:$0xff]  ;;  %v165_v4 = vld [vmem:[#allocation8] sm:$0xff]  ;;  %v172_v7 = vld [vmem:[#allocation10 + $0x10] sm:$0xff]  ;;  %vm174_vm1 = vcmask 261120  }
  0xa2   :  { %779 = vmatprep.mubr.msk.f32.mxu0 %vm1241_vm0, %v1242_v1  ;;  %790 = vmatprep.mubr.msk.f32.mxu1 %vm1241_vm0, %v1242_v1  ;;  %v886_v5 = vpack.c.bf16 %v171_v3, %v170_v2  ;;  %v166_v6 = vld [vmem:[#allocation8 + $0x8] sm:$0xff]  ;;  %v173_v8 = vld [vmem:[#allocation10 + $0x18] sm:$0xff]  ;;  %v167_v10 = vld [vmem:[#allocation8 + $0x10] sm:$0xff] }
  0xa3   :  { %v892_v9 = vpack.c.bf16 %v166_v6, %v165_v4  ;;  %v168_v11 = vld [vmem:[#allocation8 + $0x18] sm:$0xff]  ;;  %v889_v12 = vpack.c.bf16 %v173_v8, %v172_v7  ;;  %v322_v14 = vld [vmem:[#allocation11] sm:$0xff]  ;;  %v323_v15 = vld [vmem:[#allocation11 + $0x8] sm:$0xff] }
  0xa4   :  { %887 = vmatpush3.bf16.msra.mxu0 %v886_v5  ;;  %v895_v13 = vpack.c.bf16 %v168_v11, %v167_v10  ;;  %v401_v16 = vld [vmem:[#allocation13] sm:$0xff]  ;;  %v402_v17 = vld [vmem:[#allocation13 + $0x8] sm:$0xff]  ;;  %v169_v18 = vld [vmem:[#allocation5] sm:$0xff]  ;;  %v898_v19 = vpack.c.bf16 %v323_v15, %v322_v14 }
  0xa5   :  { %893 = vmatpush3.bf16.msra.mxu1 %v892_v9  ;;  %888 = vmatprep.subr.bf16.mxu0 %v1240_v0  ;;  %v164_v20 = vld [vmem:[#allocation2] sm:$0xff]  ;;  %v904_v21 = vpack.c.bf16 %v402_v17, %v401_v16  ;;  %v324_v22 = vld [vmem:[#allocation11 + $0x10] sm:$0xff]  ;;  %v325_v23 = vld [vmem:[#allocation11 + $0x18] sm:$0xff] }
  0xa6   :  { %894 = vmatprep.subr.bf16.mxu1 %v1240_v0  ;;  %v403_v24 = vld [vmem:[#allocation13 + $0x10] sm:$0xff]  ;;  %v404_v25 = vld [vmem:[#allocation13 + $0x18] sm:$0xff]  ;;  %v901_v26 = vpack.c.bf16 %v325_v23, %v324_v22  ;;  %v488_v28 = vld [vmem:[#allocation14] sm:$0xff] }
  0xa7   :  { %v907_v27 = vpack.c.bf16 %v404_v25, %v403_v24  ;;  %v489_v29 = vld [vmem:[#allocation14 + $0x8] sm:$0xff]  ;;  %v321_v30 = vld [vmem:[#allocation7] sm:$0xff]  ;;  %v490_v33 = vld [vmem:[#allocation14 + $0x10] sm:$0xff] }
  0xa8   :  { %890 = vmatpush3.bf16.msra.mxu0 %v889_v12  ;;  %v910_v31 = vpack.c.bf16 %v489_v29, %v488_v28  ;;  %v400_v32 = vld [vmem:[%s1546_s3] sm:$0xff]  ;;  %v491_v34 = vld [vmem:[#allocation14 + $0x18] sm:$0xff]  ;;  %v492_v36 = vld [vmem:[#allocation14 + $0x20] sm:$0xff] }
  0xa9   :  { %896 = vmatpush3.bf16.msra.mxu1 %v895_v13  ;;  %897 = vmatprep.subr.bf16.mxu0 %v1240_v0  ;;  %v913_v35 = vpack.c.bf16 %v491_v34, %v490_v33  ;;  %v493_v37 = vld [vmem:[#allocation14 + $0x28] sm:$0xff]  ;;  %v494_v39 = vld [vmem:[#allocation14 + $0x30] sm:$0xff]  ;;  %v495_v40 = vld [vmem:[#allocation14 + $0x38] sm:$0xff] }
  0xaa   :  { %903 = vmatprep.subr.bf16.mxu1 %v1240_v0  ;;  %v916_v38 = vpack.c.bf16 %v493_v37, %v492_v36  ;;  %v919_v41 = vpack.c.bf16 %v495_v40, %v494_v39  ;;  %v496_v42 = vld [vmem:[#allocation14 + $0x40] sm:$0xff]  ;;  %v497_v43 = vld [vmem:[#allocation14 + $0x48] sm:$0xff]  ;;  %v498_v45 = vld [vmem:[#allocation14 + $0x50] sm:$0xff] }
  0xab   :  { %780 = vmatmul.mubr.msk.f32.vlgmr.msra.gmra.mrb[0].mxu0 %vm174_vm1, %v169_v18  ;;  %v922_v44 = vpack.c.bf16 %v497_v43, %v496_v42  ;;  %v499_v46 = vld [vmem:[#allocation14 + $0x58] sm:$0xff]  ;;  %v500_v48 = vld [vmem:[#allocation14 + $0x60] sm:$0xff]  ;;  %v501_v49 = vld [vmem:[#allocation14 + $0x68] sm:$0xff] }
  0xac   :  { %791 = vmatmul.mubr.msk.f32.vlgmr.msra.gmra.mrb[0].mxu1 %vm174_vm1, %v164_v20  ;;  %899 = vmatpush3.bf16.msra.mxu0 %v898_v19  ;;  %v925_v47 = vpack.c.bf16 %v499_v46, %v498_v45  ;;  %v928_v50 = vpack.c.bf16 %v501_v49, %v500_v48  ;;  %v502_v51 = vld [vmem:[#allocation14 + $0x70] sm:$0xff]  ;;  %v503_v52 = vld [vmem:[#allocation14 + $0x78] sm:$0xff]  ;;  %v583_v54 = vld [vmem:[#allocation16] sm:$0xff] }
  0xad   :  { %905 = vmatpush3.bf16.msra.mxu1 %v904_v21  ;;  %900 = vmatprep.subr.bf16.mxu0 %v1240_v0  ;;  %v931_v53 = vpack.c.bf16 %v503_v52, %v502_v51  ;;  %v584_v55 = vld [vmem:[#allocation16 + $0x8] sm:$0xff]  ;;  %v585_v56 = vld [vmem:[#allocation16 + $0x10] sm:$0xff]  ;;  %v586_v58 = vld [vmem:[#allocation16 + $0x18] sm:$0xff] }
  0xae   :  { %906 = vmatprep.subr.bf16.mxu1 %v1240_v0  ;;  %801 = vmatprep.mubr.msk.f32.mxu0 %vm1241_vm0, %v1242_v1  ;;  %v934_v57 = vpack.c.bf16 %v584_v55, %v583_v54  ;;  %v937_v59 = vpack.c.bf16 %v586_v58, %v585_v56  ;;  %v587_v60 = vld [vmem:[#allocation16 + $0x20] sm:$0xff]  ;;  %v588_v61 = vld [vmem:[#allocation16 + $0x28] sm:$0xff]  ;;  %v589_v63 = vld [vmem:[#allocation16 + $0x30] sm:$0xff] }
  0xaf   :  { %812 = vmatprep.mubr.msk.f32.mxu1 %vm1241_vm0, %v1242_v1  ;;  %v940_v62 = vpack.c.bf16 %v588_v61, %v587_v60  ;;  %v591_v3 = vld [vmem:[#allocation16 + $0x40] sm:$0xff]  ;;  %v592_v4 = vld [vmem:[#allocation16 + $0x48] sm:$0xff]  ;;  %v593_v6 = vld [vmem:[#allocation16 + $0x50] sm:$0xff] }
  0xb0   :  { %902 = vmatpush3.bf16.msra.mxu0 %v901_v26  ;;  %v946_v5 = vpack.c.bf16 %v592_v4, %v591_v3  ;;  %v594_v7 = vld [vmem:[#allocation16 + $0x58] sm:$0xff]  ;;  %v595_v9 = vld [vmem:[#allocation16 + $0x60] sm:$0xff]  ;;  %v596_v10 = vld [vmem:[#allocation16 + $0x68] sm:$0xff] }
  0xb1   :  { %908 = vmatpush3.bf16.msra.mxu1 %v907_v27  ;;  %909 = vmatprep.subr.bf16.mxu0 %v1240_v0  ;;  %v949_v8 = vpack.c.bf16 %v594_v7, %v593_v6  ;;  %v952_v11 = vpack.c.bf16 %v596_v10, %v595_v9  ;;  %v714_v21 = vld [vmem:[%s1551_s8] ss:$0 sm:$0xff]  ;;  %v597_v26 = vld [vmem:[#allocation16 + $0x70] sm:$0xff]  ;;  %s1243_s8 = smov [#allocation18]  }
  0xb2   :  { %933 = vmatprep.subr.bf16.mxu1 %v1240_v0  ;;  %v715_v28 = vld [vmem:[%s1553_s10] ss:$0 sm:$0xff]  ;;  %s693_s16 = sshll.u32 %s1243_s8, 4  ;;  %s694_s16 = int_to_ptr.vmem [resolvable:$true] %s693_s16 }
  0xb3   :  { %802 = vmatmul.mubr.msk.f32.vlgmr.msra.gmra.mrb[2].mxu0 %vm174_vm1, %v321_v30  ;;  %s1171_s20 = scalar_lea.vmem %s694_s16, 128  ;;  %p1176_p3 = scmp.lt.s32.totalorder %s694_s16, %s694_s16 }
  0xb4   :  { %813 = vmatmul.mubr.msk.f32.vlgmr.msra.gmra.mrb[2].mxu1 %vm174_vm1, %v400_v32  ;;  %911 = vmatpush3.bf16.msra.mxu0 %v910_v31  ;;  %p1172_p2 = scmp.ne.s32.totalorder %s694_s16, %s1171_s20  ;;  %p1177_p4 = scmp.lt.s32.totalorder %s1171_s20, %s1171_s20 }
  0xb5   :  { %912 = vmatprep.subr.bf16.mxu0 %v1240_v0  ;;  %847 = vmatprep.mubr.msk.f32.mxu0 %vm1241_vm0, %v1242_v1 }
  0xb6   :  { %882 = vmatprep.mubr.msk.f32.mxu1 %vm1241_vm0, %v1242_v1  ;;  %935 = vmatpush3.bf16.msra.mxu1 %v934_v57  ;;  %v590_v1 = vld [vmem:[#allocation16 + $0x38] sm:$0xff]  ;;  %p1178_p5 = por %p1177_p4, %p1176_p3 }
  0xb7   :  { %936 = vmatprep.subr.bf16.mxu1 %v1240_v0  ;;  %v943_v2 = vpack.c.bf16 %v590_v1, %v589_v63 }
  0xb8   :  { %914 = vmatpush3.bf16.msra.mxu0 %v913_v35  ;;  %p1179_p6 = pnand %p1178_p5, %p1172_p2 }
  0xb9   :  { %915 = vmatprep.subr.bf16.mxu0 %v1240_v0 }
  0xba   :  { %938 = vmatpush3.bf16.msra.mxu1 %v937_v59 }
  0xbb   :  { %939 = vmatprep.subr.bf16.mxu1 %v1240_v0 }
  0xbc   :  { %917 = vmatpush3.bf16.msra.mxu0 %v916_v38 }
  0xbd   :  { %918 = vmatprep.subr.bf16.mxu0 %v1240_v0 }
  0xbe   :  { %941 = vmatpush3.bf16.msra.mxu1 %v940_v62 }
  0xbf   :  { %942 = vmatprep.subr.bf16.mxu1 %v1240_v0 }
  0xc0   :  { %920 = vmatpush3.bf16.msra.mxu0 %v919_v41 }
  0xc1   :  { %921 = vmatprep.subr.bf16.mxu0 %v1240_v0 }
  0xc2   :  { %944 = vmatpush3.bf16.msra.mxu1 %v943_v2 }
  0xc3   :  { %945 = vmatprep.subr.bf16.mxu1 %v1240_v0 }
  0xc4   :  { %923 = vmatpush3.bf16.msra.mxu0 %v922_v44 }
  0xc5   :  { %924 = vmatprep.subr.bf16.mxu0 %v1240_v0 }
  0xc6   :  { %947 = vmatpush3.bf16.msra.mxu1 %v946_v5 }
  0xc7   :  { %948 = vmatprep.subr.bf16.mxu1 %v1240_v0 }
  0xc8   :  { %926 = vmatpush3.bf16.msra.mxu0 %v925_v47 }
  0xc9   :  { %927 = vmatprep.subr.bf16.mxu0 %v1240_v0 }
  0xca   :  { %950 = vmatpush3.bf16.msra.mxu1 %v949_v8 }
  0xcb   :  { %951 = vmatprep.subr.bf16.mxu1 %v1240_v0 }
  0xcc   :  { %929 = vmatpush3.bf16.msra.mxu0 %v928_v50 }
  0xcd   :  { %930 = vmatprep.subr.bf16.mxu0 %v1240_v0 }
  0xce   :  { %953 = vmatpush3.bf16.msra.mxu1 %v952_v11 }
  0xcf   :  { %954 = vmatprep.subr.bf16.mxu1 %v1240_v0  ;;  %v598_v0 = vld [vmem:[#allocation16 + $0x78] sm:$0xff] }
  0xd0   :  { %932 = vmatpush3.bf16.msra.mxu0 %v931_v53  ;;  %v955_v27 = vpack.c.bf16 %v598_v0, %v597_v26 }
  0xd2   :  { %956 = vmatpush3.bf16.msra.mxu1 %v955_v27 }
 0x17e   :  { %v244_v12 = vpop.f32.mrb[0].mxu0 }
 0x17f   :  { %v781_v13 = vpop.f32.mrb[1].mxu0  ;;  %v317_v14 = vpop.f32.mrb[0].mxu1 }
 0x180   :  { %v318_v15 = vadd.f32 %v317_v14, %v244_v12  ;;  %v792_v16 = vpop.f32.mrb[1].mxu1 }
 0x186   :  { %v395_v17 = vpop.f32.mrb[2].mxu0 }
 0x187   :  { %v399_v18 = vadd.f32 %v395_v17, %v318_v15  ;;  %v803_v19 = vpop.f32.mrb[3].mxu0  ;;  %v474_v20 = vpop.f32.mrb[2].mxu1 }
 0x188   :  { %v814_v22 = vpop.f32.mrb[3].mxu1 }
 0x189   :  { %v478_v23 = vadd.f32 %v474_v20, %v399_v18 }
 0x18b   :  { %v486_v24 = vadd.f32 %v714_v21, %v478_v23 }
 0x18d   :  { %v487_v25 = vmax.f32 %v486_v24, 0.0 }
 0x18f   :  { %848 = vmatmul.mubr.f32.vlgmr.msra.gmra.mrb[4].mxu0 %v487_v25 }
 0x262   :  { %v577_v29 = vpop.f32.mrb[4].mxu0 }
 0x263   :  { %v578_v30 = vadd.f32 %v715_v28, %v577_v29  ;;  %v849_v31 = vpop.f32.mrb[5].mxu0 }
 0x265   :  { %v581_v32 = vmax.f32 %v578_v30, 0.0 }
 0x267   :  { %582 = vst [vmem:[#allocation18] sm:$0xff] %v581_v32  ;;  %883 = vmatmul.mubr.f32.vlgmr.msra.gmra.mrb[4].mxu1 %v581_v32 }
 0x268   :  { %1182 = shalt.err (!%p1179_p6)
}
 0x269   :  { %s1183_s10 = scalar_lea.hbm %s1557_s14, 128 }
 0x26a   :  { %p1184_p7 = scmp.ne.s32.totalorder %s1557_s14, %s1183_s10  ;;  %p1187_p8 = scmp.lt.u32.totalorder %s1183_s10, %s1557_s14 }
 0x26c   :  { %p1189_p9 = pnand %p1187_p8, %p1184_p7 }
 0x26e   :  { %1192 = shalt.err (!%p1189_p9)
}
 0x26f   :  { %696 = dma.vmem_to_hbm [thread:$0]  %s694_s16, 128, %s1557_s14, [#allocation19]   ;;  %v716_v33 = vld [vmem:[%s1555_s12] ss:$0 sm:$0xff] }
 0x270   :  { %s1244_s29 = smov [#allocation17]  }
 0x271   :  { %s683_s15 = sshll.u32 %s1244_s29, 4  ;;  %s684_s15 = int_to_ptr.vmem [resolvable:$true] %s683_s15 }
 0x272   :  { %s1193_s6 = scalar_lea.vmem %s684_s15, 128  ;;  %p1198_p11 = scmp.lt.s32.totalorder %s684_s15, %s684_s15 }
 0x273   :  { %p1194_p10 = scmp.ne.s32.totalorder %s684_s15, %s1193_s6  ;;  %p1199_p12 = scmp.lt.s32.totalorder %s1193_s6, %s1193_s6 }
 0x275   :  { %p1200_p13 = por %p1199_p12, %p1198_p11 }
 0x277   :  { %p1201_p0 = pnand %p1200_p13, %p1194_p10 }
 0x33a   :  { %v672_v34 = vpop.f32.mrb[4].mxu1 }
 0x33b   :  { %v673_v35 = vadd.f32 %v716_v33, %v672_v34  ;;  %v884_v36 = vpop.f32.mrb[5].mxu1 }
 0x33d   :  { %676 = vst [vmem:[#allocation17] sm:$0xff] %v673_v35 }
 0x33e   :  { %1204 = shalt.err (!%p1201_p0)
}
 0x33f   :  { %s1205_s4 = scalar_lea.hbm %s1556_s13, 128 }
 0x340   :  { %p1206_p1 = scmp.ne.s32.totalorder %s1556_s13, %s1205_s4  ;;  %p1209_p2 = scmp.lt.u32.totalorder %s1205_s4, %s1556_s13 }
 0x342   :  { %p1211_p3 = pnand %p1209_p2, %p1206_p1 }
 0x344   :  { %1214 = shalt.err (!%p1211_p3)
}
 0x345   :  { %686 = dma.vmem_to_hbm [thread:$0]  %s684_s15, 128, %s1556_s13, [#allocation4]  }
 0x346   :  { %1225 = dma.done.wait [#allocation4], 128  }
 0x347   :  { %1226 = vsyncadd [#allocation4], 4294967168 }
 0x348   :  { %1227 = dma.done.wait [#allocation19], 128  }
 0x349   :  { %1228 = vsyncadd [#allocation19], 4294967168 }
 0x34a   :  { %703 = vsyncpa [#allocation3], 1 }
 0x34b   :  { %704 = vsyncpa [#allocation6], 1 }
 0x34c   :  { %705 = vsyncpa [#allocation9], 1 }
 0x34d   :  { %706 = vsyncpa [#allocation12], 1 }
 0x34e   :  { %707 = vsyncpa [#allocation15], 1 }
 0x34f   :  { %708 = vsyncpa [#allocation4], 1 }
 0x350   :  { %709 = vsyncpa [#allocation19], 1 }

</bundles_post_ra>
